<compile_context>
chip_gen: v7x
topology: tpu7x:2x2x1
jax: 0.10.0
libtpu: 0.0.40
codegen_flags: <defaults>
</compile_context>

<pallas_src>
import functools

import jax
import jax.numpy as jnp
from jax import lax
from jax.experimental import pallas as pl
from jax.experimental.pallas import tpu as pltpu


# Contract dim 1 of both operands (F @ F^T without materializing the transpose).
_CONTRACT_DIMS = (((1,), (1,)), ((), ()))


# ---------------------------------------------------------------------------
# Kernels
# ---------------------------------------------------------------------------

def _masked_tile(f_ref, *, m, tk, ragged):
    """Load the current (n, tk) F tile; zero out columns past the true m."""
    f = f_ref[...]
    if ragged:
        k = pl.program_id(0)
        col = k * tk + lax.broadcasted_iota(jnp.int32, f.shape, 1)
        f = jnp.where(col < m, f, jnp.zeros_like(f))
    return f


def _gram_kernel(f_ref, g_ref, *, scale, m, tk, ragged):
    """Accumulate G = (F @ F^T) * scale across the k (= c*d tile) grid axis."""
    k = pl.program_id(0)

    @pl.when(k == 0)
    def _():
        g_ref[...] = jnp.zeros_like(g_ref)

    f = _masked_tile(f_ref, m=m, tk=tk, ragged=ragged)
    g_ref[...] += lax.dot_general(
        f, f, _CONTRACT_DIMS, preferred_element_type=jnp.float32)

    @pl.when(k == pl.num_programs(0) - 1)
    def _():
        g_ref[...] = g_ref[...] * scale


def _gram_mse_kernel(f_ref, tgt_ref, loss_ref, acc_ref, *,
                     scale, inv_count, m, tk, ragged):
    """Loss-only: accumulate gram in VMEM scratch, MSE vs target at last step."""
    k = pl.program_id(0)

    @pl.when(k == 0)
    def _():
        acc_ref[...] = jnp.zeros_like(acc_ref)

    f = _masked_tile(f_ref, m=m, tk=tk, ragged=ragged)
    acc_ref[...] += lax.dot_general(
        f, f, _CONTRACT_DIMS, preferred_element_type=jnp.float32)

    @pl.when(k == pl.num_programs(0) - 1)
    def _():
        diff = acc_ref[...] * scale - tgt_ref[...]
        loss_ref[0, 0] = jnp.sum(diff * diff) * inv_count


# ---------------------------------------------------------------------------
# Tiling / VMEM-budget helpers
# ---------------------------------------------------------------------------

def _vmem_limits():
    """(vmem_limit_bytes, usable budget for tiling) for the current chip."""
    phys = 64 * 1024 * 1024  # conservative fallback (v7x per-core VMEM)
    try:
        info = pltpu.get_tpu_info()
        for attr in ("vmem_capacity_bytes", "vmem_bytes", "vmem_size_bytes"):
            val = getattr(info, attr, None)
            if val:
                phys = int(val)
                break
    except Exception:
        pass
    # ~48 MiB on v7x (64 MiB phys), ~96 MiB on v5e/v6e (128 MiB phys).
    limit = min((phys * 3) // 4, 96 * 1024 * 1024)
    budget = limit - 4 * 1024 * 1024  # headroom for compiler scratch
    return int(limit), int(budget)


def _choose_tiling(n, m, itemsize, budget_bytes):
    """Pick the contraction tile tk from the VMEM budget.

    Resident: f32 (n,n) accumulator + (double-buffered) f32 (n,n) target.
    Streaming: two pipeline buffers of the (n, tk) F slab.
    """
    resident = 3 * n * n * 4
    avail = max(budget_bytes - resident, 2 * 128 * n * itemsize)
    tk_max = avail // (2 * n * itemsize)
    tk_max = max(128, min(int(tk_max), 16384))
    if m <= tk_max:
        # Whole contraction in one full-width tile: full-dim block, no masking.
        return m, 1, False
    tk = (tk_max // 128) * 128
    num_k = int(pl.cdiv(m, tk))
    ragged = (m % tk) != 0
    return tk, num_k, ragged
    # TODO(synk): for n (= batch*channels) large enough that 3*n*n*4 no longer
    # fits the VMEM budget (n >~ 1.5k on v7x), add a row-block grid axis over
    # the gram so the accumulator is tiled too, and a 2-way "parallel" k-split
    # so both v7x TensorCores share the HBM stream.


def _features(x, stream_dtype=None):
    """Flatten NCHW -> (n, m) view (no padding, no HBM copy)."""
    a, b, c, d = x.shape
    n, m = a * b, c * d
    f = x.reshape(n, m)
    if stream_dtype is not None and f.dtype != stream_dtype:
        f = f.astype(stream_dtype)
    return f, n, m


def _compiler_params(vmem_limit):
    return pltpu.CompilerParams(
        dimension_semantics=("arbitrary",),
        vmem_limit_bytes=vmem_limit,
    )


# ---------------------------------------------------------------------------
# Wrappers
# ---------------------------------------------------------------------------

def gram_matrix(x, *, stream_dtype=None):
    """Pallas gram matrix of an NCHW tensor x: (a*b, a*b), f32."""
    f, n, m = _features(x, stream_dtype)
    vmem_limit, budget = _vmem_limits()
    tk, num_k, ragged = _choose_tiling(n, m, f.dtype.itemsize, budget)
    scale = 1.0 / float(n * m)  # == 1 / (a*b*c*d)
    return pl.pallas_call(
        functools.partial(_gram_kernel, scale=scale, m=m, tk=tk, ragged=ragged),
        out_shape=jax.ShapeDtypeStruct((n, n), jnp.float32),
        grid=(num_k,),
        in_specs=[pl.BlockSpec((n, tk), lambda k: (0, k))],
        out_specs=pl.BlockSpec((n, n), lambda k: (0, 0)),
        compiler_params=_compiler_params(vmem_limit),
        cost_estimate=pl.CostEstimate(
            flops=2 * n * n * m,
            bytes_accessed=n * m * f.dtype.itemsize + n * n * 4,
            transcendentals=0),
    )(f)


def gram_mse_loss(x, target_gram, *, stream_dtype=None):
    """MSE between gram_matrix(x) and the precomputed (n, n) target gram."""
    f, n, m = _features(x, stream_dtype)
    assert target_gram.shape == (n, n)
    vmem_limit, budget = _vmem_limits()
    tk, num_k, ragged = _choose_tiling(n, m, f.dtype.itemsize, budget)
    scale = 1.0 / float(n * m)
    inv_count = 1.0 / float(n * n)
    loss = pl.pallas_call(
        functools.partial(_gram_mse_kernel, scale=scale, inv_count=inv_count,
                          m=m, tk=tk, ragged=ragged),
        out_shape=jax.ShapeDtypeStruct((1, 1), jnp.float32),
        grid=(num_k,),
        in_specs=[
            pl.BlockSpec((n, tk), lambda k: (0, k)),
            # TODO(synk): single-buffer this constant-index block
            # (pipeline_mode=pl.Buffered(1)) once validated; its second
            # pipeline buffer is accounted for in the tk budget instead.
            pl.BlockSpec((n, n), lambda k: (0, 0)),
        ],
        out_specs=pl.BlockSpec((1, 1), lambda k: (0, 0),
                               memory_space=pltpu.MemorySpace.SMEM),
        scratch_shapes=[pltpu.VMEM((n, n), jnp.float32)],
        compiler_params=_compiler_params(vmem_limit),
        cost_estimate=pl.CostEstimate(
            flops=2 * n * n * m + 3 * n * n,
            bytes_accessed=n * m * f.dtype.itemsize + n * n * 4 + 4,
            transcendentals=0),
    )(f, target_gram.astype(jnp.float32))
    return loss[0, 0]


class StyleLoss:
    """JAX/Pallas equivalent of the PyTorch StyleLoss module.

    stream_dtype=jnp.bfloat16 enables the half-bandwidth streaming fast path
    (accumulation stays f32); default None keeps the exact f32 stream.
    """

    def __init__(self, target_feature, *, stream_dtype=None):
        self._stream_dtype = stream_dtype
        # Target gram is fixed ("detached") at construction; keep the kernel
        # output directly — no slice / re-pad round trips.
        self.target = gram_matrix(target_feature, stream_dtype=stream_dtype)
        self.loss = None

    def __call__(self, x):
        self.loss = gram_mse_loss(x, self.target,
                                  stream_dtype=self._stream_dtype)
        return x  # forward is a pass-through; loss is a side value


# ---------------------------------------------------------------------------
# Main
# ---------------------------------------------------------------------------

if __name__ == "__main__":
    key = jax.random.PRNGKey(0)
    k_tgt, k_in = jax.random.split(key)

    # NCHW, small shapes: batch=2, channels=4, spatial=16x16
    target_feature = jax.random.normal(k_tgt, (2, 4, 16, 16), dtype=jnp.float32)
    x = jax.random.normal(k_in, (2, 4, 16, 16), dtype=jnp.float32)

    module = StyleLoss(target_feature)
    out = module(x)
    out = jax.block_until_ready(out)
    loss = jax.block_until_ready(module.loss)

    # Pure-JAX reference check
    def ref_gram(t):
        a, b, c, d = t.shape
        fr = t.reshape(a * b, c * d)
        return (fr @ fr.T) / (a * b * c * d)

    g_ref_tgt = ref_gram(target_feature)
    g_ref_in = ref_gram(x)
    loss_ref = jnp.mean((g_ref_in - g_ref_tgt) ** 2)

    assert jnp.allclose(out, x), "forward must return input unchanged"
    assert jnp.allclose(module.target, g_ref_tgt, rtol=1e-5, atol=1e-5)
    assert jnp.allclose(loss, loss_ref, rtol=1e-5, atol=1e-5)

    print("KERNEL_OK")
</pallas_src>

<mosaic_0001>
module attributes {stable_mosaic.version = 11 : i64} {
  func.func @_gram_kernel(%arg0: i32, %arg1: memref<8x256xf32, #tpu.memory_space<vmem>>, %arg2: memref<8x8xf32, #tpu.memory_space<vmem>>) attributes {dimension_semantics = [#tpu.dimension_semantics<arbitrary>], iteration_bounds = array<i64: 1>, scalar_prefetch = 0 : i64, scratch_operands = 0 : i64, tpu.core_type = #tpu.core_type<tc>, window_params = [{transform_indices = @transform_0, window_bounds = array<i64: 8, 256>}, {pipeline_mode = #tpu.pipeline_mode<synchronous>, transform_indices = @transform_1, window_bounds = array<i64: 8, 8>}]} {
    %c0_i32 = arith.constant 0 : i32
    %0 = arith.cmpi eq, %arg0, %c0_i32 : i32
    %1 = arith.extui %0 : i1 to i32
    %c0_i32_0 = arith.constant 0 : i32
    %2 = arith.cmpi ne, %1, %c0_i32_0 : i32
    scf.if %2 {
      %cst_8 = arith.constant 0.000000e+00 : f32
      %11 = vector.broadcast %cst_8 : f32 to vector<8x8xf32>
      %c0_9 = arith.constant 0 : index
      %c0_10 = arith.constant 0 : index
      %12 = vector.load %arg2[%c0_9, %c0_10] : memref<8x8xf32, #tpu.memory_space<vmem>>, vector<8x8xf32>
      tpu.vector_store %arg2[%c0_9, %c0_10], %11 {strides = array<i32>} : memref<8x8xf32, #tpu.memory_space<vmem>>, vector<8x8xf32>,
    } else {
    }
    %c0 = arith.constant 0 : index
    %c0_1 = arith.constant 0 : index
    %3 = vector.load %arg1[%c0, %c0_1] : memref<8x256xf32, #tpu.memory_space<vmem>>, vector<8x256xf32>
    %c0_2 = arith.constant 0 : index
    %c0_3 = arith.constant 0 : index
    %4 = vector.load %arg2[%c0_2, %c0_3] : memref<8x8xf32, #tpu.memory_space<vmem>>, vector<8x8xf32>
    %cst = arith.constant dense<0.000000e+00> : vector<8x8xf32>
    %5 = tpu.matmul %3, %3, %cst {dimension_numbers = #tpu.dot_dimension_numbers<[1], [1], [0], [0], [0, 0, 1, 0], [], []>} : vector<8x256xf32>, vector<8x256xf32>, vector<8x8xf32> -> vector<8x8xf32>
    %6 = arith.addf %4, %5 : vector<8x8xf32>
    %c0_4 = arith.constant 0 : index
    %c0_5 = arith.constant 0 : index
    %7 = vector.load %arg2[%c0_4, %c0_5] : memref<8x8xf32, #tpu.memory_space<vmem>>, vector<8x8xf32>
    tpu.vector_store %arg2[%c0_4, %c0_5], %6 {strides = array<i32>} : memref<8x8xf32, #tpu.memory_space<vmem>>, vector<8x8xf32>,
    %c0_i32_6 = arith.constant 0 : i32
    %8 = arith.cmpi eq, %arg0, %c0_i32_6 : i32
    %9 = arith.extui %8 : i1 to i32
    %c0_i32_7 = arith.constant 0 : i32
    %10 = arith.cmpi ne, %9, %c0_i32_7 : i32
    scf.if %10 {
      %c0_8 = arith.constant 0 : index
      %c0_9 = arith.constant 0 : index
      %11 = vector.load %arg2[%c0_8, %c0_9] : memref<8x8xf32, #tpu.memory_space<vmem>>, vector<8x8xf32>
      %cst_10 = arith.constant 4.8828125E-4 : f32
      %12 = vector.broadcast %cst_10 : f32 to vector<8x8xf32>
      %13 = arith.mulf %11, %12 : vector<8x8xf32>
      %c0_11 = arith.constant 0 : index
      %c0_12 = arith.constant 0 : index
      %14 = vector.load %arg2[%c0_11, %c0_12] : memref<8x8xf32, #tpu.memory_space<vmem>>, vector<8x8xf32>
      tpu.vector_store %arg2[%c0_11, %c0_12], %13 {strides = array<i32>} : memref<8x8xf32, #tpu.memory_space<vmem>>, vector<8x8xf32>,
    } else {
    }
    return
  }
  func.func @transform_0(%arg0: i32) -> (i32, i32) {
    %c0_i32 = arith.constant 0 : i32
    %c0_i32_0 = arith.constant 0 : i32
    return %c0_i32, %arg0 : i32, i32
  }
  func.func @transform_1(%arg0: i32) -> (i32, i32) {
    %c0_i32 = arith.constant 0 : i32
    %c0_i32_0 = arith.constant 0 : i32
    %c0_i32_1 = arith.constant 0 : i32
    return %c0_i32, %c0_i32_0 : i32, i32
  }
}

</mosaic_0001>

<bundles_post_ra>
// kernel: tpu_custom_call.1
= control target key start
LH: loop header
LB: loop body
LE: loop exit
PB: predicated region body
PF: predicated region fallthrough
CT: control target
= control target key end

     0   :  { %6 = vsyncpa [#allocation3], 0  ;;  %s215_s0 = inlined_call_operand.hbm [shape: f32[8,256], index: 0, kind: input, shape index: {}]   ;;  %s216_s1 = inlined_call_operand.hbm [shape: f32[8,8], index: 1, kind: output, shape index: {}]  }
   0x1   :  { %7 = vsyncpa [#allocation4], 0  ;;  %s175_s6 = smov [#allocation2]   ;;  %s127_s10 = scalar_lea.hbm %s215_s0, 256 }
   0x2   :  { %s14_s7 = sshll.u32 %s175_s6, 4  ;;  %p128_p0 = scmp.ne.s32.totalorder %s215_s0, %s127_s10  ;;  %s15_s7 = int_to_ptr.vmem [resolvable:$true] %s14_s7 }
   0x3   :  { %p131_p1 = scmp.lt.u32.totalorder %s127_s10, %s215_s0 }
   0x5   :  { %p133_p2 = pnand %p131_p1, %p128_p0 }
   0x7   :  { %136 = shalt.err (!%p133_p2)
}
   0x8   :  { %s137_s15 = scalar_lea.vmem %s15_s7, 256  ;;  %p142_p4 = scmp.lt.s32.totalorder %s15_s7, %s15_s7 }
   0x9   :  { %p138_p3 = scmp.ne.s32.totalorder %s15_s7, %s137_s15  ;;  %p143_p5 = scmp.lt.s32.totalorder %s137_s15, %s137_s15 }
   0xb   :  { %p144_p6 = por %p143_p5, %p142_p4 }
   0xd   :  { %p145_p7 = pnand %p144_p6, %p138_p3 }
   0xf   :  { %148 = shalt.err (!%p145_p7)
}
  0x10   :  { %17 = dma.hbm_to_vmem [thread:$0]  %s215_s0, 256, %s15_s7, [#allocation3]  }
  0x11   :  { %171 = dma.done.wait [#allocation3], 256  }
  0x12   :  { %172 = vsyncadd [#allocation3], 4294967040  ;;  %vm25_vm0 = vcmask 64512   ;;  %v176_v0 = vmov 0.0   ;;  %v28_v1 = vld [vmem:[#allocation2 + $0x8] sm:$0xff]  ;;  %v27_v2 = vld [vmem:[#allocation2] sm:$0xff] }
  0x13   :  { %26 = vst.msk [vmem:[#allocation5] sm:$0xff] %vm25_vm0, %v176_v0  ;;  %30 = vmatprep.subr.mxu0 %v28_v1  ;;  %94 = vmatprep.mubr.f32.mxu0 %v28_v1  ;;  %s177_s18 = smov [#allocation5]  }
  0x14   :  { %31 = vmatpush1.xpose.msra.mxu0 %v27_v2  ;;  %s115_s0 = sshll.u32 %s177_s18, 4  ;;  %s116_s0 = int_to_ptr.vmem [resolvable:$true] %s115_s0 }
  0x15   :  { %s149_s19 = scalar_lea.vmem %s116_s0, 128  ;;  %p154_p9 = scmp.lt.s32.totalorder %s116_s0, %s116_s0 }
  0x16   :  { %p150_p8 = scmp.ne.s32.totalorder %s116_s0, %s149_s19  ;;  %p155_p10 = scmp.lt.s32.totalorder %s149_s19, %s149_s19 }
  0x17   :  { %95 = vmatmul.mubr.f32.vlgmr.msra.gmra.mrb[0].mxu0 %v27_v2 }
  0x18   :  { %p156_p11 = por %p155_p10, %p154_p9 }
  0x1a   :  { %v29_v3 = vld [vmem:[#allocation5] sm:$0xff]  ;;  %p157_p12 = pnand %p156_p11, %p150_p8 }
  0xea   :  { %v96_v4 = vpop.f32.mrb[0].mxu0 }
  0xeb   :  { %v100_v5 = vadd.f32 %v96_v4, %v29_v3  ;;  %v98_v6 = vpop.f32.mrb[1].mxu0 }
  0xed   :  { %102 = vst.msk [vmem:[#allocation5] sm:$0xff] %vm25_vm0, %v100_v5 }
  0xf4   :  { %v106_v7 = vld [vmem:[#allocation5] sm:$0xff] }
  0xf5   :  { %v107_v8 = vmul.f32 0.00048828125, %v106_v7 }
  0xf7   :  { %108 = vst.msk [vmem:[#allocation5] sm:$0xff] %vm25_vm0, %v107_v8 }
  0xf8   :  { %160 = shalt.err (!%p157_p12)
}
  0xf9   :  { %s161_s22 = scalar_lea.hbm %s216_s1, 128 }
  0xfa   :  { %p162_p13 = scmp.ne.s32.totalorder %s216_s1, %s161_s22  ;;  %p165_p0 = scmp.lt.u32.totalorder %s161_s22, %s216_s1 }
  0xfc   :  { %p167_p1 = pnand %p165_p0, %p162_p13 }
  0xfe   :  { %170 = shalt.err (!%p167_p1)
}
  0xff   :  { %118 = dma.vmem_to_hbm [thread:$0]  %s116_s0, 128, %s216_s1, [#allocation4]  }
 0x100   :  { %173 = dma.done.wait [#allocation4], 128  }
 0x101   :  { %174 = vsyncadd [#allocation4], 4294967168 }
 0x102   :  { %122 = vsyncpa [#allocation3], 1 }
 0x103   :  { %123 = vsyncpa [#allocation4], 1 }

</bundles_post_ra>
